<compile_context>
chip_gen: v6e
topology: v6e:2x2x1
jax: 0.10.0
libtpu: 0.0.40
codegen_flags: <defaults>
</compile_context>

<pallas_src>
import math
from functools import partial

import jax
import jax.numpy as jnp
from jax.experimental import pallas as pl
from jax.experimental.pallas import tpu as pltpu

_SUB = 8      # sublanes per vreg
_LANE = 128   # lanes per vreg


def _define_out_channels(likelihood):
    table = {
        None: 1, 'bernoulli': 1, 'crossentropy': 1, 'gaussian': 2, 'gamma': 2,
        'gamma_nonzero': 2, 'gumbel': 2, 'halfnormal': 1, 'lognormal': 2,
        'ggmm': 5, 'bgmm': 3, 'b2gmm': 6, 'b2sgmm': 7, 'btgmm': 4,
        'bernoulli_gaussian': 3, 'bernoulli_lognormal': 3,
        'bernoulli_gumbel': 3, 'bernoulli_halfnormal': 2,
    }
    return table[likelihood]


def _round_up(a, b):
    return (a + b - 1) // b * b


def _tpu_generation():
    """Best-effort TPU generation (5/6/7/...); None on CPU/unknown."""
    try:
        kind = jax.devices()[0].device_kind.lower()
    except Exception:
        return None
    if 'tpu' not in kind:
        return None
    for gen in (7, 6, 5, 4, 3, 2):
        if (f'v{gen}' in kind) or (f'tpu{gen}' in kind):
            return gen
    return None


def _vglm_bgmm_kernel(x_ref, w_ref, b_ref, cap_ref, sig_ref, o_ref):
    # x_ref: (TMp, Kp)   w_ref: (Kp, Cp)   b_ref/cap_ref/sig_ref: (1, Cp)
    # o_ref: (TMp, Cp)
    y = jnp.dot(x_ref[...], w_ref[...], preferred_element_type=jnp.float32)
    y = y + b_ref[...]                            # bias broadcast over rows

    # One exp per element.  cap = 20 on sigmoid lanes (sigmoid(20) ~ 1-2e-9),
    # +inf on exp lanes, so exp lanes stay exact and e is finite where the
    # sigmoid result is actually used.
    e = jnp.exp(jnp.minimum(y, cap_ref[...]))

    is_sig = sig_ref[...] > 0.5                   # (1, Cp) bool, broadcast
    # Keep the select form: on exp lanes e may be inf and e/(1+e) is NaN, but
    # the lane select discards it.  Exact divide (no approx reciprocal).
    o_ref[...] = jnp.where(is_sig, e / (1.0 + e), e).astype(o_ref.dtype)


def vglm_forward(x, weight, bias, *, tile_m=32768):
    """VGLM forward, likelihood='bgmm'.

    x: (..., K); weight: (C, K); bias: (C,) -> (..., C)
    """
    k = x.shape[-1]
    c = weight.shape[0]
    lead = x.shape[:-1]
    m = int(math.prod(lead)) if lead else 1

    gen = _tpu_generation()

    # ---- packing factors ---------------------------------------------------
    # Pad C (3 -> 4) and fold p rows so the packed output width cp = c_pad * p
    # is lane-dense: 128 lanes on v6e/v7x, 64 on v5e (less wasted MXU work).
    c_pad = _round_up(c, 4)
    target_cp = 64 if gen == 5 else _LANE
    p = max(1, target_cp // c_pad)
    # Keep the block-diagonal weight (kp, cp) small enough to stay resident.
    while p > 1 and (k * p) * (c_pad * p) * 4 > (2 << 20):
        p //= 2
    kp, cp = k * p, c_pad * p

    # ---- row padding / tiling ----------------------------------------------
    # Only a tiny (< p rows) tail pad so the packed reshape is legal; the grid
    # itself handles a partial last block (no full-copy pad of x).
    m_p = _round_up(m, p)
    rows_p = m_p // p                              # packed rows

    tmp = _round_up(max(1, pl.cdiv(tile_m, p)), _SUB)   # packed rows per step
    tmp = min(tmp, _round_up(rows_p, _SUB))
    if rows_p >= 4 * _SUB:
        # Keep >= ~4 grid steps so v7x's two TensorCores both get work.
        tmp = min(tmp, _round_up(pl.cdiv(rows_p, 4), _SUB))
    grid_m = pl.cdiv(rows_p, tmp)

    # Generation-aware scoped-VMEM limit (v7x has only 64 MiB physical).
    vmem_limit = {5: 64 << 20, 6: 96 << 20, 7: 48 << 20}.get(gen, 32 << 20)

    # ---- operands ------------------------------------------------------------
    x2 = x.reshape(m, k)
    if m_p != m:
        # TODO(synk): fuse/skip this copy (allow_input_fusion or ragged tail).
        x2 = jnp.pad(x2, ((0, m_p - m), (0, 0)))
    xp = x2.reshape(rows_p, kp)                    # contiguous -> free reshape

    w_pad = jnp.zeros((c_pad, k), weight.dtype).at[:c].set(weight)   # (c_pad, K)
    w_bd = jnp.kron(jnp.eye(p, dtype=weight.dtype), w_pad.T).astype(x.dtype)
    b_pad = jnp.zeros((c_pad,), jnp.float32).at[:c].set(bias.astype(jnp.float32))
    b2 = jnp.tile(b_pad, p).reshape(1, cp)

    ch = jnp.arange(cp, dtype=jnp.int32) % c_pad
    is_sig_col = ch == 0                           # bgmm: channel 0 -> sigmoid
    cap = jnp.where(is_sig_col, 20.0, jnp.inf).astype(jnp.float32).reshape(1, cp)
    sig = is_sig_col.astype(jnp.float32).reshape(1, cp)

    out_p = pl.pallas_call(
        _vglm_bgmm_kernel,
        out_shape=jax.ShapeDtypeStruct((rows_p, cp), x.dtype),
        grid_spec=pltpu.PrefetchScalarGridSpec(
            num_scalar_prefetch=0,
            grid=(grid_m,),
            in_specs=[
                pl.BlockSpec((tmp, kp), lambda i: (i, 0)),   # x (packed)
                pl.BlockSpec((kp, cp), lambda i: (0, 0)),    # block-diag W^T
                pl.BlockSpec((1, cp), lambda i: (0, 0)),     # bias
                pl.BlockSpec((1, cp), lambda i: (0, 0)),     # sigmoid cap
                pl.BlockSpec((1, cp), lambda i: (0, 0)),     # sigmoid mask
            ],
            out_specs=pl.BlockSpec((tmp, cp), lambda i: (i, 0)),
        ),
        compiler_params=pltpu.CompilerParams(
            dimension_semantics=("parallel",),
            vmem_limit_bytes=vmem_limit,
        ),
    )(xp, w_bd, b2, cap, sig)

    out = out_p.reshape(m_p, c_pad)[:m, :c]
    return out.reshape(*lead, c)


def vglm_reference(x, weight, bias):
    y = jnp.einsum('...k,ck->...c', x.astype(jnp.float32),
                   weight.astype(jnp.float32)) + bias.astype(jnp.float32)
    return jnp.concatenate(
        [jax.nn.sigmoid(y[..., :1]), jnp.exp(y[..., 1:])], axis=-1)


if __name__ == "__main__":
    key = jax.random.PRNGKey(0)
    # m = 4*150 = 600 original rows: exercises the tiny tail pad (600 % 32 != 0
    # when p=32) and a multi-step grid with a partial last block.
    batch, seq, in_channels = 4, 150, 32
    likelihood = 'bgmm'
    out_channels = _define_out_channels(likelihood)   # = 3

    k_x, k_w, k_b = jax.random.split(key, 3)
    x = jax.random.normal(k_x, (batch, seq, in_channels), dtype=jnp.float32)

    # nn.Linear-style init: U(-1/sqrt(K), 1/sqrt(K))
    bound = 1.0 / math.sqrt(in_channels)
    weight = jax.random.uniform(k_w, (out_channels, in_channels),
                                minval=-bound, maxval=bound, dtype=jnp.float32)
    bias = jax.random.uniform(k_b, (out_channels,),
                              minval=-bound, maxval=bound, dtype=jnp.float32)

    # Small tile here so the demo runs a 3-step grid with a ragged tail.
    # Production default is tile_m=32768 original rows (~4 MiB x tile).
    out = vglm_forward(x, weight, bias, tile_m=256)
    out = jax.block_until_ready(out)

    ref = vglm_reference(x, weight, bias)
    assert out.shape == (batch, seq, out_channels)
    assert bool(jnp.all(jnp.isfinite(out)))
    assert jnp.allclose(out, ref, atol=1e-3, rtol=1e-3)

    print("KERNEL_OK")
</pallas_src>

<mosaic_0001>
module attributes {stable_mosaic.version = 11 : i64} {
  func.func @_vglm_bgmm_kernel(%arg0: i32, %arg1: memref<8x1024xf32, #tpu.memory_space<vmem>>, %arg2: memref<1024x128xf32, #tpu.memory_space<vmem>>, %arg3: memref<1x128xf32, #tpu.memory_space<vmem>>, %arg4: memref<1x128xf32, #tpu.memory_space<vmem>>, %arg5: memref<1x128xf32, #tpu.memory_space<vmem>>, %arg6: memref<8x128xf32, #tpu.memory_space<vmem>>) attributes {dimension_semantics = [#tpu.dimension_semantics<parallel>], iteration_bounds = array<i64: 3>, scalar_prefetch = 0 : i64, scratch_operands = 0 : i64, tpu.core_type = #tpu.core_type<tc>, window_params = [{transform_indices = @transform_0, window_bounds = array<i64: 8, 1024>}, {pipeline_mode = #tpu.pipeline_mode<synchronous>, transform_indices = @transform_1, window_bounds = array<i64: 1024, 128>}, {pipeline_mode = #tpu.pipeline_mode<synchronous>, transform_indices = @transform_2, window_bounds = array<i64: 1, 128>}, {pipeline_mode = #tpu.pipeline_mode<synchronous>, transform_indices = @transform_3, window_bounds = array<i64: 1, 128>}, {pipeline_mode = #tpu.pipeline_mode<synchronous>, transform_indices = @transform_4, window_bounds = array<i64: 1, 128>}, {transform_indices = @transform_5, window_bounds = array<i64: 8, 128>}]} {
    %c0 = arith.constant 0 : index
    %c0_0 = arith.constant 0 : index
    %0 = vector.load %arg1[%c0, %c0_0] : memref<8x1024xf32, #tpu.memory_space<vmem>>, vector<8x1024xf32>
    %c0_1 = arith.constant 0 : index
    %c0_2 = arith.constant 0 : index
    %1 = vector.load %arg2[%c0_1, %c0_2] : memref<1024x128xf32, #tpu.memory_space<vmem>>, vector<1024x128xf32>
    %cst = arith.constant dense<0.000000e+00> : vector<8x128xf32>
    %2 = tpu.matmul %0, %1, %cst {dimension_numbers = #tpu.dot_dimension_numbers<[1], [0], [0], [1], [0, 0, 1, 1], [], []>} : vector<8x1024xf32>, vector<1024x128xf32>, vector<8x128xf32> -> vector<8x128xf32>
    %c0_3 = arith.constant 0 : index
    %c0_4 = arith.constant 0 : index
    %3 = vector.load %arg3[%c0_3, %c0_4] : memref<1x128xf32, #tpu.memory_space<vmem>>, vector<1x128xf32>
    %4 = vector.broadcast %3 : vector<1x128xf32> to vector<8x128xf32>
    %5 = arith.addf %2, %4 : vector<8x128xf32>
    %c0_5 = arith.constant 0 : index
    %c0_6 = arith.constant 0 : index
    %6 = vector.load %arg4[%c0_5, %c0_6] : memref<1x128xf32, #tpu.memory_space<vmem>>, vector<1x128xf32>
    %7 = vector.broadcast %6 : vector<1x128xf32> to vector<8x128xf32>
    %8 = arith.minimumf %5, %7 : vector<8x128xf32>
    %9 = math.exp %8 : vector<8x128xf32>
    %c0_7 = arith.constant 0 : index
    %c0_8 = arith.constant 0 : index
    %10 = vector.load %arg5[%c0_7, %c0_8] : memref<1x128xf32, #tpu.memory_space<vmem>>, vector<1x128xf32>
    %cst_9 = arith.constant 5.000000e-01 : f32
    %11 = vector.broadcast %cst_9 : f32 to vector<1x128xf32>
    %12 = arith.cmpf ogt, %10, %11 : vector<1x128xf32>
    %cst_10 = arith.constant 1.000000e+00 : f32
    %13 = vector.broadcast %cst_10 : f32 to vector<8x128xf32>
    %14 = arith.addf %13, %9 : vector<8x128xf32>
    %15 = arith.divf %9, %14 : vector<8x128xf32>
    %16 = vector.shape_cast %12 : vector<1x128xi1> to vector<1x128xi1>
    %17 = vector.broadcast %16 : vector<1x128xi1> to vector<8x128xi1>
    %18 = arith.select %17, %15, %9 : vector<8x128xi1>, vector<8x128xf32>
    %c0_11 = arith.constant 0 : index
    %c0_12 = arith.constant 0 : index
    %19 = vector.load %arg6[%c0_11, %c0_12] : memref<8x128xf32, #tpu.memory_space<vmem>>, vector<8x128xf32>
    tpu.vector_store %arg6[%c0_11, %c0_12], %18 {strides = array<i32>} : memref<8x128xf32, #tpu.memory_space<vmem>>, vector<8x128xf32>,
    return
  }
  func.func @transform_0(%arg0: i32) -> (i32, i32) {
    %c0_i32 = arith.constant 0 : i32
    %c0_i32_0 = arith.constant 0 : i32
    return %arg0, %c0_i32 : i32, i32
  }
  func.func @transform_1(%arg0: i32) -> (i32, i32) {
    %c0_i32 = arith.constant 0 : i32
    %c0_i32_0 = arith.constant 0 : i32
    %c0_i32_1 = arith.constant 0 : i32
    return %c0_i32, %c0_i32_0 : i32, i32
  }
  func.func @transform_2(%arg0: i32) -> (i32, i32) {
    %c0_i32 = arith.constant 0 : i32
    %c0_i32_0 = arith.constant 0 : i32
    %c0_i32_1 = arith.constant 0 : i32
    return %c0_i32, %c0_i32_0 : i32, i32
  }
  func.func @transform_3(%arg0: i32) -> (i32, i32) {
    %c0_i32 = arith.constant 0 : i32
    %c0_i32_0 = arith.constant 0 : i32
    %c0_i32_1 = arith.constant 0 : i32
    return %c0_i32, %c0_i32_0 : i32, i32
  }
  func.func @transform_4(%arg0: i32) -> (i32, i32) {
    %c0_i32 = arith.constant 0 : i32
    %c0_i32_0 = arith.constant 0 : i32
    %c0_i32_1 = arith.constant 0 : i32
    return %c0_i32, %c0_i32_0 : i32, i32
  }
  func.func @transform_5(%arg0: i32) -> (i32, i32) {
    %c0_i32 = arith.constant 0 : i32
    %c0_i32_0 = arith.constant 0 : i32
    return %arg0, %c0_i32 : i32, i32
  }
}

</mosaic_0001>

<bundles_post_ra>
// kernel: tpu_custom_call.1
= control target key start
LH: loop header
LB: loop body
LE: loop exit
PB: predicated region body
PF: predicated region fallthrough
CT: control target
= control target key end

     0   :  { %10 = vsyncpa [#allocation3], 0  ;;  %s1356_s0 = inlined_call_operand.hbm [shape: f32[19,1024], index: 0, kind: input, shape index: {}]   ;;  %s1357_s1 = inlined_call_operand.hbm [shape: f32[1024,128], index: 1, kind: input, shape index: {}]   ;;  %s1358_s2 = inlined_call_operand.vmem [shape: f32[1,128], index: 2, kind: input, shape index: {}]   ;;  %s1359_s3 = inlined_call_operand.vmem [shape: f32[1,128], index: 3, kind: input, shape index: {}]   ;;  %s1360_s4 = inlined_call_operand.vmem [shape: f32[1,128], index: 4, kind: input, shape index: {}]   ;;  %s1361_s5 = inlined_call_operand.hbm [shape: f32[19,128], index: 5, kind: output, shape index: {}]  }
   0x1   :  { %12 = vsyncpa [#allocation3 + $0x1], 0 }
   0x2   :  { %13 = vsyncpa [#allocation6], 0 }
   0x3   :  { %14 = vsyncpa [#allocation4], 0 }
   0x4   :  { %16 = vsyncpa [#allocation4 + $0x1], 0  ;;  %s1178_s18 = smov 0   ;;  %s1180_s19 = smov 0  }
   0x5   :  { %s1182_s20 = smov 0   ;;  %s1184_s21 = smov 0  }
   0x6 LB: > { %s1199_s22 = sadd.s32 4294967295, %s1140_s21   ;;  %s796_s23 = sadd.s32 4294967294, %s1140_s21   ;;  %s1140_s21 = sphi %s1184_s21, %s1382_s21   ;;  %s1136_s20 = sphi %s1182_s20, %s1381_s20   ;;  %s1132_s19 = sphi %s1180_s19, %s1380_s19   ;;  %s1128_s18 = sphi %s1178_s18, %s1379_s18  }
   0x7   : > { %p42_p0 = scmp.ne.s32.totalorder %s1132_s19, %s1128_s18  ;;  %p1362_p1 = scmp.eq.s32.totalorder %s1199_s22, 0 }
   0x8   : > { %p156_p3 = scmp.eq.s32.totalorder %s796_s23, 2  ;;  %p797_p5 = scmp.ge.s32.totalorder %s1140_s21, 1 }
   0x9   : > { %p1208_p4 = por %p1362_p1, %p42_p0  ;;  %p163_p7 = scmp.lt.s32.totalorder %s1140_s21, 4 }
   0xa   : > { %p1213_p6 = por %p156_p3, %p42_p0  ;;  %s1142_s27 = smov [#allocation5]  }
   0xb   : > { %s1366_s24 = scalar_select %p1208_p4, 1, 0 }
   0xc   : > { %s1367_s25 = scalar_select %p1213_p6, 1, 0 }
   0xd   : > { %p1218_p8 = pnand %p797_p5, %p163_p7  ;;  %s175_s28 = sshll.u32 %s1142_s27, 4  ;;  %s176_s28 = int_to_ptr.vmem [resolvable:$true] %s175_s28 }
   0xe   : > { %s1231_s30 = sadd.s32 1, %s1140_s21   ;;  %s29_s6 = sadd.s32 1, %s1136_s20 }
   0xf   : > { %s1368_s26 = scalar_select %p1218_p8, 1, 0 }
  0x10   : > { %p962_p9 = pneg %p1218_p8  ;;  %s26_s7 = ssub.s32 %s1140_s21, %s1231_s30 }
  0x11   : > { %s1029_s8 = scalar_lea.vmem %s176_s28, 16384  ;;  %p1037_p3 = scmp.lt.s32.totalorder %s176_s28, %s176_s28 }
  0x12   : > { %p1226_p10 = pnand %p962_p9, %p1362_p1  ;;  %p1030_p12 = scmp.ne.s32.totalorder %s176_s28, %s1029_s8 }
  0x13   : > { %p1038_p5 = scmp.lt.s32.totalorder %s1029_s8, %s1029_s8 }
  0x14   : > { %p1020_p11 = pneg %p1226_p10 }
  0x15   : > { %p1039_p7 = por %p1038_p5, %p1037_p3 }
  0x16   : > { %p1032_p13 = pnand %p1030_p12, %p1020_p11 }
  0x18   : > { %p1033_p0 = pneg %p1032_p13 }
  0x1a   : > { %p1040_p2 = pnand %p1039_p7, %p1033_p0 }
  0x1c   : > { %1043 = shalt.err (!%p1040_p2)
}
  0x1d   : > { %s1143_s9 = smov 128   ;;  %s1144_s10 = smov 8  }
  0x1e   : > { %965 = dma.hbm_to_vmem [thread:$0]  (!%p1226_p10), %s1357_s1, 16384, %s176_s28, [#allocation6], %s1143_s9, %s1143_s9, %s1144_s10  }
  0x1f   : > { %p27_p9 = scmp.eq.s32.totalorder %s26_s7, 0  ;;  %p36_p11 = scmp.ne.s32.totalorder %s1136_s20, %s1132_s19 }
  0x20   : > { %p37_p12 = scmp.eq.s32.totalorder %s1140_s21, 0  ;;  %p975_p2 = scmp.lt.s32.totalorder %s1140_s21, 3 }
  0x21   : > { %s1248_s13 = scalar_select %p27_p9, %s1136_s20, %s29_s6  }
  0x22   : > { %p38_p13 = por %p37_p12, %p36_p11  ;;  %p1370_p0 = scmp.eq.s32.totalorder %s1199_s22, 2 }
  0x23   : > { %s198_s15 = sand.u32 1, %s1136_s20   ;;  %s813_s16 = sshll.u32 %s1140_s21, 10 }
  0x24   : > { %p1252_p3 = por %p1370_p0, %p36_p11  ;;  %s800_s17 = sshll.u32 %s198_s15, 6 }
  0x25   : > { %s1261_s29 = scalar_lea.hbm %s1356_s0, %s813_s16  ;;  %s202_s28 = scalar_lea.vmem [#allocation2], %s800_s17 }
  0x26   : > { %s1371_s14 = scalar_select %p1252_p3, 1, 0 }
  0x27   : > { %s210_s6 = sshll.u32 %s202_s28, 4  ;;  %p1263_p10 = pnand %p975_p2, %p38_p13  ;;  %s211_s6 = int_to_ptr.vmem [resolvable:$true] %s210_s6 }
  0x28   : > { %s199_s8 = scalar_lea.sflag [#allocation3], %s198_s15  ;;  %s1044_s9 = scalar_lea.hbm %s1261_s29, 1024 }
  0x29   : > { %p1045_p5 = scmp.ne.s32.totalorder %s1261_s29, %s1044_s9  ;;  %p1046_p7 = pneg %p1263_p10 }
  0x2a   : > { %s1049_s12 = scalar_lea.hbm %s1356_s0, 3072  ;;  %p1050_p12 = scmp.lt.s32.totalorder %s1261_s29, %s1356_s0 }
  0x2b   : > { %p1047_p9 = pnand %p1046_p7, %p1045_p5  ;;  %p1051_p2 = scmp.lt.s32.totalorder %s1049_s12, %s1044_s9 }
  0x2d   : > { %p1048_p11 = pneg %p1047_p9  ;;  %p1052_p13 = por %p1051_p2, %p1050_p12 }
  0x2f   : > { %p1053_p0 = pnand %p1052_p13, %p1048_p11 }
  0x31   : > { %1056 = shalt.err (!%p1053_p0)
}
  0x32   : > { %s1057_s23 = scalar_lea.vmem %s211_s6, 1024  ;;  %s1145_s15 = smov [#allocation2]  }
  0x33   : > { %p1058_p1 = scmp.ne.s32.totalorder %s211_s6, %s1057_s23  ;;  %s1062_s27 = sshll.u32 %s1145_s15, 4  ;;  %s1063_s27 = int_to_ptr.vmem [resolvable:$false] %s1062_s27 }
  0x34   : > { %s1064_s28 = scalar_lea.vmem %s1063_s27, 2048  ;;  %p1065_p5 = scmp.lt.s32.totalorder %s211_s6, %s1063_s27 }
  0x35   : > { %p1060_p6 = pnand %p1058_p1, %p1046_p7  ;;  %p1066_p9 = scmp.lt.s32.totalorder %s1064_s28, %s1057_s23 }
  0x37   : > { %p1061_p3 = pneg %p1060_p6  ;;  %p1067_p4 = por %p1066_p9, %p1065_p5 }
  0x39   : > { %p1068_p8 = pnand %p1067_p4, %p1061_p3 }
  0x3b   : > { %1071 = shalt.err (!%p1068_p8)
}
  0x3c   : > { %969 = dma.hbm_to_vmem [thread:$0]  (!%p1263_p10), %s1261_s29, 1024, %s211_s6, %s199_s8  }
  0x3d   : > { %p1373_p11 = scmp.ne.s32.totalorder %s1368_s26, 0 }
  0x3e   : > { %s1284_s9 = sand.u32 (!%p1373_p11), 1, %s1132_s19   ;;  %p1374_p1 = scmp.ne.s32.totalorder (!%p1373_p11), %s1366_s24, 0 }
  0x3f   : > { %219 = sbr.rel (%p1373_p11) target bundleno = 392 (0x188), region = 40  ;;  %s804_s10 = sshll.u32 (!%p1373_p11), %s1284_s9, 6 }
  0x40   : > { %s222_s11 = scalar_lea.sflag (!%p1373_p11), [#allocation3], %s1284_s9  ;;  %s1288_s12 = scalar_lea.vmem (!%p1373_p11), [#allocation2], %s804_s10 }
  0x44   : > { %1115 = dma.done.wait (%p1374_p1), %s222_s11, 1024  }
  0x45   : > { %1117 = vsyncadd (%p1374_p1), %s222_s11, 4294966272  ;;  %p1375_p4 = scmp.eq.s32.totalorder %s1199_s22, 0 }
  0x47   : > { %1119 = dma.done.wait (%p1375_p4), [#allocation6], 16384   ;;  %p1376_p6 = pmov %p1375_p4 }
  0x48   : > { %v295_v0 = vld [vmem:[#allocation5 + $0xf8] sm:$0xff]  ;;  %v294_v4 = vld [vmem:[#allocation5 + $0xf0] sm:$0xff]  ;;  %v293_v8 = vld [vmem:[#allocation5 + $0xe8] sm:$0xff]  ;;  %s806_s16 = sshll.u32 %s1284_s9, 3  ;;  %s810_s17 = sshll.u32 %s1199_s22, 7 }
  0x49   : > { %1121 = vsyncadd (%p1376_p6), [#allocation6], 4294950912  ;;  %v327_v1 = vld [vmem:[#allocation5 + $0x1f8] sm:$0xff]  ;;  %814 = vmatprep.subr.mxu0 %v295_v0  ;;  %v326_v5 = vld [vmem:[#allocation5 + $0x1f0] sm:$0xff]  ;;  %s255_s23 = scalar_lea.vmem [#allocation7], %s806_s16  ;;  %s1320_s10 = scalar_lea.hbm %s1361_s5, %s810_s17 }
  0x4a   : > { %v279_v2 = vld [vmem:[#allocation5 + $0x78] sm:$0xff]  ;;  %849 = vmatprep.subr.mxu1 %v327_v1  ;;  %v278_v6 = vld [vmem:[#allocation5 + $0x70] sm:$0xff]  ;;  %v325_v9 = vld [vmem:[#allocation5 + $0x1e8] sm:$0xff]  ;;  %s716_s15 = sshll.u32 %s255_s23, 4  ;;  %s703_s11 = scalar_lea.sflag [#allocation4], %s1284_s9  ;;  %s717_s15 = int_to_ptr.vmem [resolvable:$true] %s716_s15 }
  0x4b   : > { %v311_v3 = vld [vmem:[#allocation5 + $0x178] sm:$0xff]  ;;  %815 = vmatpush3.msra.mxu0 %v279_v2  ;;  %v310_v7 = vld [vmem:[#allocation5 + $0x170] sm:$0xff]  ;;  %v277_v10 = vld [vmem:[#allocation5 + $0x68] sm:$0xff]  ;;  %p1377_p3 = scmp.ne.s32.totalorder %s1371_s14, 0  ;;  %s1147_s22 = smov [#allocation7]  }
  0x4c   : > { %850 = vmatpush3.msra.mxu1 %v311_v3  ;;  %816 = vmatprep.subr.mxu0 %v294_v4  ;;  %v309_v11 = vld [vmem:[#allocation5 + $0x168] sm:$0xff]  ;;  %v292_v12 = vld [vmem:[#allocation5 + $0xe0] sm:$0xff]  ;;  %v291_v16 = vld [vmem:[#allocation5 + $0xd8] sm:$0xff]  ;;  %s1076_s24 = sshll.u32 %s1147_s22, 4  ;;  %s1077_s24 = int_to_ptr.vmem [resolvable:$false] %s1076_s24 }
  0x4d   : > { %851 = vmatprep.subr.mxu1 %v326_v5  ;;  %817 = vmatpush3.msra.mxu0 %v278_v6  ;;  %v324_v13 = vld [vmem:[#allocation5 + $0x1e0] sm:$0xff]  ;;  %v323_v17 = vld [vmem:[#allocation5 + $0x1d8] sm:$0xff]  ;;  %v290_v20 = vld [vmem:[#allocation5 + $0xd0] sm:$0xff]  ;;  %s1078_s26 = scalar_lea.vmem %s1077_s24, 256  ;;  %p1079_p12 = scmp.lt.s32.totalorder %s717_s15, %s1077_s24 }
  0x4e   : > { %852 = vmatpush3.msra.mxu1 %v310_v7  ;;  %818 = vmatprep.subr.mxu0 %v293_v8  ;;  %v276_v14 = vld [vmem:[#allocation5 + $0x60] sm:$0xff]  ;;  %v275_v18 = vld [vmem:[#allocation5 + $0x58] sm:$0xff]  ;;  %v322_v21 = vld [vmem:[#allocation5 + $0x1d0] sm:$0xff] }
  0x4f   : > { %853 = vmatprep.subr.mxu1 %v325_v9  ;;  %v308_v15 = vld [vmem:[#allocation5 + $0x160] sm:$0xff]  ;;  %819 = vmatpush3.msra.mxu0 %v277_v10  ;;  %v307_v19 = vld [vmem:[#allocation5 + $0x158] sm:$0xff]  ;;  %v274_v22 = vld [vmem:[#allocation5 + $0x50] sm:$0xff] }
  0x50   : > { %854 = vmatpush3.msra.mxu1 %v309_v11  ;;  %820 = vmatprep.subr.mxu0 %v292_v12  ;;  %v306_v23 = vld [vmem:[#allocation5 + $0x150] sm:$0xff]  ;;  %v289_v24 = vld [vmem:[#allocation5 + $0xc8] sm:$0xff]  ;;  %v288_v28 = vld [vmem:[#allocation5 + $0xc0] sm:$0xff] }
  0x51   : > { %855 = vmatprep.subr.mxu1 %v324_v13  ;;  %821 = vmatpush3.msra.mxu0 %v276_v14  ;;  %v321_v25 = vld [vmem:[#allocation5 + $0x1c8] sm:$0xff]  ;;  %v320_v29 = vld [vmem:[#allocation5 + $0x1c0] sm:$0xff]  ;;  %v287_v32 = vld [vmem:[#allocation5 + $0xb8] sm:$0xff] }
  0x52   : > { %856 = vmatpush3.msra.mxu1 %v308_v15  ;;  %822 = vmatprep.subr.mxu0 %v291_v16  ;;  %v273_v26 = vld [vmem:[#allocation5 + $0x48] sm:$0xff]  ;;  %v272_v30 = vld [vmem:[#allocation5 + $0x40] sm:$0xff]  ;;  %v319_v33 = vld [vmem:[#allocation5 + $0x1b8] sm:$0xff] }
  0x53   : > { %857 = vmatprep.subr.mxu1 %v323_v17  ;;  %823 = vmatpush3.msra.mxu0 %v275_v18  ;;  %v305_v27 = vld [vmem:[#allocation5 + $0x148] sm:$0xff]  ;;  %v304_v31 = vld [vmem:[#allocation5 + $0x140] sm:$0xff]  ;;  %v271_v34 = vld [vmem:[#allocation5 + $0x38] sm:$0xff] }
  0x54   : > { %858 = vmatpush3.msra.mxu1 %v307_v19  ;;  %824 = vmatprep.subr.mxu0 %v290_v20  ;;  %v303_v35 = vld [vmem:[#allocation5 + $0x138] sm:$0xff]  ;;  %v286_v36 = vld [vmem:[#allocation5 + $0xb0] sm:$0xff]  ;;  %v285_v40 = vld [vmem:[#allocation5 + $0xa8] sm:$0xff] }
  0x55   : > { %859 = vmatprep.subr.mxu1 %v322_v21  ;;  %825 = vmatpush3.msra.mxu0 %v274_v22  ;;  %v318_v37 = vld [vmem:[#allocation5 + $0x1b0] sm:$0xff]  ;;  %v317_v41 = vld [vmem:[#allocation5 + $0x1a8] sm:$0xff]  ;;  %v284_v44 = vld [vmem:[#allocation5 + $0xa0] sm:$0xff] }
  0x56   : > { %860 = vmatpush3.msra.mxu1 %v306_v23  ;;  %826 = vmatprep.subr.mxu0 %v289_v24  ;;  %v270_v38 = vld [vmem:[#allocation5 + $0x30] sm:$0xff]  ;;  %v269_v42 = vld [vmem:[#allocation5 + $0x28] sm:$0xff]  ;;  %v316_v45 = vld [vmem:[#allocation5 + $0x1a0] sm:$0xff] }
  0x57   : > { %861 = vmatprep.subr.mxu1 %v321_v25  ;;  %827 = vmatpush3.msra.mxu0 %v273_v26  ;;  %v302_v39 = vld [vmem:[#allocation5 + $0x130] sm:$0xff]  ;;  %v301_v43 = vld [vmem:[#allocation5 + $0x128] sm:$0xff]  ;;  %v268_v46 = vld [vmem:[#allocation5 + $0x20] sm:$0xff] }
  0x58   : > { %862 = vmatpush3.msra.mxu1 %v305_v27  ;;  %828 = vmatprep.subr.mxu0 %v288_v28  ;;  %v300_v47 = vld [vmem:[#allocation5 + $0x120] sm:$0xff]  ;;  %v283_v48 = vld [vmem:[#allocation5 + $0x98] sm:$0xff]  ;;  %v282_v52 = vld [vmem:[#allocation5 + $0x90] sm:$0xff] }
  0x59   : > { %863 = vmatprep.subr.mxu1 %v320_v29  ;;  %829 = vmatpush3.msra.mxu0 %v272_v30  ;;  %v315_v49 = vld [vmem:[#allocation5 + $0x198] sm:$0xff]  ;;  %v314_v53 = vld [vmem:[#allocation5 + $0x190] sm:$0xff]  ;;  %v281_v56 = vld [vmem:[#allocation5 + $0x88] sm:$0xff] }
  0x5a   : > { %864 = vmatpush3.msra.mxu1 %v304_v31  ;;  %830 = vmatprep.subr.mxu0 %v287_v32  ;;  %v267_v50 = vld [vmem:[#allocation5 + $0x18] sm:$0xff]  ;;  %v266_v54 = vld [vmem:[#allocation5 + $0x10] sm:$0xff]  ;;  %v313_v57 = vld [vmem:[#allocation5 + $0x188] sm:$0xff] }
  0x5b   : > { %865 = vmatprep.subr.mxu1 %v319_v33  ;;  %831 = vmatpush3.msra.mxu0 %v271_v34  ;;  %v299_v51 = vld [vmem:[#allocation5 + $0x118] sm:$0xff]  ;;  %v298_v55 = vld [vmem:[#allocation5 + $0x110] sm:$0xff]  ;;  %v265_v58 = vld [vmem:[#allocation5 + $0x8] sm:$0xff] }
  0x5c   : > { %866 = vmatpush3.msra.mxu1 %v303_v35  ;;  %832 = vmatprep.subr.mxu0 %v286_v36  ;;  %v297_v59 = vld [vmem:[#allocation5 + $0x108] sm:$0xff]  ;;  %v280_v60 = vld [vmem:[#allocation5 + $0x80] sm:$0xff]  ;;  %v259_v2 = vld [vmem:[%s1288_s12 + $0x18] sm:$0xff] }
  0x5d   : > { %867 = vmatprep.subr.mxu1 %v318_v37  ;;  %833 = vmatpush3.msra.mxu0 %v270_v38  ;;  %v312_v61 = vld [vmem:[#allocation5 + $0x180] sm:$0xff]  ;;  %v257_v63 = vld [vmem:[%s1288_s12 + $0x8] sm:$0xff]  ;;  %v359_v3 = vld [vmem:[#allocation5 + $0x2f8] sm:$0xff] }
  0x5e   : > { %868 = vmatpush3.msra.mxu1 %v302_v39  ;;  %834 = vmatprep.subr.mxu0 %v285_v40  ;;  %v264_v62 = vld [vmem:[#allocation5] sm:$0xff]  ;;  %v391_v4 = vld [vmem:[#allocation5 + $0x3f8] sm:$0xff]  ;;  %v258_v5 = vld [vmem:[%s1288_s12 + $0x10] sm:$0xff] }
  0x5f   : > { %869 = vmatprep.subr.mxu1 %v317_v41  ;;  %835 = vmatpush3.msra.mxu0 %v269_v42  ;;  %v296_v0 = vld [vmem:[#allocation5 + $0x100] sm:$0xff]  ;;  %v343_v6 = vld [vmem:[#allocation5 + $0x278] sm:$0xff]  ;;  %v358_v8 = vld [vmem:[#allocation5 + $0x2f0] sm:$0xff] }
  0x60   : > { %870 = vmatpush3.msra.mxu1 %v301_v43  ;;  %836 = vmatprep.subr.mxu0 %v284_v44  ;;  %v256_v1 = vld [vmem:[%s1288_s12] sm:$0xff]  ;;  %v375_v7 = vld [vmem:[#allocation5 + $0x378] sm:$0xff]  ;;  %v390_v9 = vld [vmem:[#allocation5 + $0x3f0] sm:$0xff] }
  0x61   : > { %871 = vmatprep.subr.mxu1 %v316_v45  ;;  %837 = vmatpush3.msra.mxu0 %v268_v46  ;;  %v342_v10 = vld [vmem:[#allocation5 + $0x270] sm:$0xff]  ;;  %v357_v12 = vld [vmem:[#allocation5 + $0x2e8] sm:$0xff]  ;;  %v356_v16 = vld [vmem:[#allocation5 + $0x2e0] sm:$0xff] }
  0x62   : > { %872 = vmatpush3.msra.mxu1 %v300_v47  ;;  %838 = vmatprep.subr.mxu0 %v283_v48  ;;  %v374_v11 = vld [vmem:[#allocation5 + $0x370] sm:$0xff]  ;;  %v389_v13 = vld [vmem:[#allocation5 + $0x3e8] sm:$0xff]  ;;  %v388_v17 = vld [vmem:[#allocation5 + $0x3e0] sm:$0xff] }
  0x63   : > { %873 = vmatprep.subr.mxu1 %v315_v49  ;;  %839 = vmatpush3.msra.mxu0 %v267_v50  ;;  %v341_v14 = vld [vmem:[#allocation5 + $0x268] sm:$0xff]  ;;  %v340_v18 = vld [vmem:[#allocation5 + $0x260] sm:$0xff]  ;;  %v355_v20 = vld [vmem:[#allocation5 + $0x2d8] sm:$0xff] }
  0x64   : > { %874 = vmatpush3.msra.mxu1 %v299_v51  ;;  %840 = vmatprep.subr.mxu0 %v282_v52  ;;  %v373_v15 = vld [vmem:[#allocation5 + $0x368] sm:$0xff]  ;;  %v372_v19 = vld [vmem:[#allocation5 + $0x360] sm:$0xff]  ;;  %v387_v21 = vld [vmem:[#allocation5 + $0x3d8] sm:$0xff] }
  0x65   : > { %875 = vmatprep.subr.mxu1 %v314_v53  ;;  %841 = vmatpush3.msra.mxu0 %v266_v54  ;;  %v339_v22 = vld [vmem:[#allocation5 + $0x258] sm:$0xff]  ;;  %v354_v24 = vld [vmem:[#allocation5 + $0x2d0] sm:$0xff]  ;;  %v353_v28 = vld [vmem:[#allocation5 + $0x2c8] sm:$0xff] }
  0x66   : > { %876 = vmatpush3.msra.mxu1 %v298_v55  ;;  %842 = vmatprep.subr.mxu0 %v281_v56  ;;  %v371_v23 = vld [vmem:[#allocation5 + $0x358] sm:$0xff]  ;;  %v386_v25 = vld [vmem:[#allocation5 + $0x3d0] sm:$0xff]  ;;  %v385_v29 = vld [vmem:[#allocation5 + $0x3c8] sm:$0xff] }
  0x67   : > { %877 = vmatprep.subr.mxu1 %v313_v57  ;;  %843 = vmatpush3.msra.mxu0 %v265_v58  ;;  %v338_v26 = vld [vmem:[#allocation5 + $0x250] sm:$0xff]  ;;  %v337_v30 = vld [vmem:[#allocation5 + $0x248] sm:$0xff]  ;;  %v352_v32 = vld [vmem:[#allocation5 + $0x2c0] sm:$0xff] }
  0x68   : > { %878 = vmatpush3.msra.mxu1 %v297_v59  ;;  %844 = vmatprep.subr.mxu0 %v280_v60  ;;  %v370_v27 = vld [vmem:[#allocation5 + $0x350] sm:$0xff]  ;;  %v369_v31 = vld [vmem:[#allocation5 + $0x348] sm:$0xff]  ;;  %v384_v33 = vld [vmem:[#allocation5 + $0x3c0] sm:$0xff] }
  0x69   : > { %879 = vmatprep.subr.mxu1 %v312_v61  ;;  %845 = vmatpush3.msra.mxu0 %v264_v62  ;;  %v336_v34 = vld [vmem:[#allocation5 + $0x240] sm:$0xff]  ;;  %v351_v36 = vld [vmem:[#allocation5 + $0x2b8] sm:$0xff]  ;;  %v350_v40 = vld [vmem:[#allocation5 + $0x2b0] sm:$0xff] }
  0x6a   : > { %463 = vmatprep.mubr.f32.mxu0 %v257_v63  ;;  %880 = vmatpush3.msra.mxu1 %v296_v0  ;;  %v368_v35 = vld [vmem:[#allocation5 + $0x340] sm:$0xff]  ;;  %v383_v37 = vld [vmem:[#allocation5 + $0x3b8] sm:$0xff]  ;;  %v382_v41 = vld [vmem:[#allocation5 + $0x3b0] sm:$0xff] }
  0x6b   : > { %464 = vmatmul.mubr.f32.vlgmr.msra.gmra.mxu0 %v256_v1  ;;  %533 = vmatprep.mubr.f32.mxu1 %v259_v2  ;;  %v335_v38 = vld [vmem:[#allocation5 + $0x238] sm:$0xff]  ;;  %v334_v42 = vld [vmem:[#allocation5 + $0x230] sm:$0xff]  ;;  %v349_v44 = vld [vmem:[#allocation5 + $0x2a8] sm:$0xff] }
  0x6c   : > { %884 = vmatprep.subr.mxu0 %v359_v3  ;;  %919 = vmatprep.subr.mxu1 %v391_v4  ;;  %v367_v39 = vld [vmem:[#allocation5 + $0x338] sm:$0xff]  ;;  %v366_v43 = vld [vmem:[#allocation5 + $0x330] sm:$0xff]  ;;  %v381_v45 = vld [vmem:[#allocation5 + $0x3a8] sm:$0xff] }
  0x6d   : > { %534 = vmatmul.mubr.f32.vlgmr.msra.gmra.mxu1 %v258_v5  ;;  %885 = vmatpush3.msra.mxu0 %v343_v6  ;;  %v333_v46 = vld [vmem:[#allocation5 + $0x228] sm:$0xff]  ;;  %v348_v48 = vld [vmem:[#allocation5 + $0x2a0] sm:$0xff]  ;;  %v347_v52 = vld [vmem:[#allocation5 + $0x298] sm:$0xff] }
  0x6e   : > { %920 = vmatpush3.msra.mxu1 %v375_v7  ;;  %886 = vmatprep.subr.mxu0 %v358_v8  ;;  %v365_v47 = vld [vmem:[#allocation5 + $0x328] sm:$0xff]  ;;  %v380_v49 = vld [vmem:[#allocation5 + $0x3a0] sm:$0xff]  ;;  %v379_v53 = vld [vmem:[#allocation5 + $0x398] sm:$0xff] }
  0x6f   : > { %921 = vmatprep.subr.mxu1 %v390_v9  ;;  %887 = vmatpush3.msra.mxu0 %v342_v10  ;;  %v332_v50 = vld [vmem:[#allocation5 + $0x220] sm:$0xff]  ;;  %v331_v54 = vld [vmem:[#allocation5 + $0x218] sm:$0xff]  ;;  %v346_v56 = vld [vmem:[#allocation5 + $0x290] sm:$0xff] }
  0x70   : > { %922 = vmatpush3.msra.mxu1 %v374_v11  ;;  %888 = vmatprep.subr.mxu0 %v357_v12  ;;  %v364_v51 = vld [vmem:[#allocation5 + $0x320] sm:$0xff]  ;;  %v363_v55 = vld [vmem:[#allocation5 + $0x318] sm:$0xff]  ;;  %v378_v57 = vld [vmem:[#allocation5 + $0x390] sm:$0xff] }
  0x71   : > { %923 = vmatprep.subr.mxu1 %v389_v13  ;;  %889 = vmatpush3.msra.mxu0 %v341_v14  ;;  %v330_v58 = vld [vmem:[#allocation5 + $0x210] sm:$0xff]  ;;  %v345_v60 = vld [vmem:[#allocation5 + $0x288] sm:$0xff]  ;;  %v344_v0 = vld [vmem:[#allocation5 + $0x280] sm:$0xff] }
  0x72   : > { %924 = vmatpush3.msra.mxu1 %v373_v15  ;;  %890 = vmatprep.subr.mxu0 %v356_v16  ;;  %v362_v59 = vld [vmem:[#allocation5 + $0x310] sm:$0xff]  ;;  %v377_v61 = vld [vmem:[#allocation5 + $0x388] sm:$0xff]  ;;  %v376_v1 = vld [vmem:[#allocation5 + $0x380] sm:$0xff] }
  0x73   : > { %925 = vmatprep.subr.mxu1 %v388_v17  ;;  %891 = vmatpush3.msra.mxu0 %v340_v18  ;;  %v329_v62 = vld [vmem:[#allocation5 + $0x208] sm:$0xff]  ;;  %v328_v2 = vld [vmem:[#allocation5 + $0x200] sm:$0xff]  ;;  %v263_v5 = vld [vmem:[%s1288_s12 + $0x38] sm:$0xff] }
  0x74   : > { %926 = vmatpush3.msra.mxu1 %v372_v19  ;;  %892 = vmatprep.subr.mxu0 %v355_v20  ;;  %v361_v63 = vld [vmem:[#allocation5 + $0x308] sm:$0xff]  ;;  %v360_v4 = vld [vmem:[#allocation5 + $0x300] sm:$0xff]  ;;  %v262_v7 = vld [vmem:[%s1288_s12 + $0x30] sm:$0xff] }
  0x75   : > { %927 = vmatprep.subr.mxu1 %v387_v21  ;;  %893 = vmatpush3.msra.mxu0 %v339_v22  ;;  %v261_v3 = vld [vmem:[%s1288_s12 + $0x28] sm:$0xff]  ;;  %v260_v6 = vld [vmem:[%s1288_s12 + $0x20] sm:$0xff]  ;;  %s1072_s12 = scalar_lea.vmem %s717_s15, 128 }
  0x76   : > { %928 = vmatpush3.msra.mxu1 %v371_v23  ;;  %894 = vmatprep.subr.mxu0 %v354_v24  ;;  %v807_v12 = vld [vmem:[%s1358_s2] ss:$0 sm:$0xff]  ;;  %p1073_p8 = scmp.ne.s32.totalorder %s717_s15, %s1072_s12  ;;  %p1080_p2 = scmp.lt.s32.totalorder %s1078_s26, %s1072_s12 }
  0x77   : > { %929 = vmatprep.subr.mxu1 %v386_v25  ;;  %895 = vmatpush3.msra.mxu0 %v338_v26  ;;  %v808_v24 = vld [vmem:[%s1359_s3] ss:$0 sm:$0xff] }
  0x78   : > { %930 = vmatpush3.msra.mxu1 %v370_v27  ;;  %896 = vmatprep.subr.mxu0 %v353_v28  ;;  %p1074_p10 = pnand %p1073_p8, %p1377_p3  ;;  %p1081_p13 = por %p1080_p2, %p1079_p12 }
  0x79   : > { %931 = vmatprep.subr.mxu1 %v385_v29  ;;  %897 = vmatpush3.msra.mxu0 %v337_v30  ;;  %v695_v29 = vlaneseq }
  0x7a   : > { %932 = vmatpush3.msra.mxu1 %v369_v31  ;;  %898 = vmatprep.subr.mxu0 %v352_v32  ;;  %v689_v31 = vld [vmem:[%s1360_s4] sm:$0x1]  ;;  %p1075_p7 = pneg %p1074_p10 }
  0x7b   : > { %933 = vmatprep.subr.mxu1 %v384_v33  ;;  %899 = vmatpush3.msra.mxu0 %v336_v34  ;;  %v696_v32 = vshrl.u32 %v695_v29, 7  ;;  %vm690_vm0 = vcmp.gt.f32.partialorder %v689_v31, 0.5  ;;  %v1146_v34 = vmov 0  }
  0x7c   : > { %934 = vmatpush3.msra.mxu1 %v368_v35  ;;  %900 = vmatprep.subr.mxu0 %v351_v36  ;;  %v694_v35 = vsel %vm690_vm0, 1, %v1146_v34  ;;  %p1082_p0 = pnand %p1081_p13, %p1075_p7 }
  0x7d   : > { %935 = vmatprep.subr.mxu1 %v383_v37  ;;  %901 = vmatpush3.msra.mxu0 %v335_v38  ;;  %v697_v33 = vsub.s32 0, %v696_v32 }
  0x7e   : > { %936 = vmatpush3.msra.mxu1 %v367_v39  ;;  %902 = vmatprep.subr.mxu0 %v350_v40 }
  0x7f   : > { %937 = vmatprep.subr.mxu1 %v382_v41  ;;  %903 = vmatpush3.msra.mxu0 %v334_v42  ;;  %v698_v36 = vrot.slane %v694_v35, %v697_v33 }
  0x80   : > { %938 = vmatpush3.msra.mxu1 %v366_v43  ;;  %904 = vmatprep.subr.mxu0 %v349_v44 }
  0x81   : > { %939 = vmatprep.subr.mxu1 %v381_v45  ;;  %905 = vmatpush3.msra.mxu0 %v333_v46  ;;  %vm699_vm1 = vcmp.eq.s32.totalorder %v698_v36, 1 }
  0x82   : > { %940 = vmatpush3.msra.mxu1 %v365_v47  ;;  %906 = vmatprep.subr.mxu0 %v348_v48 }
  0x83   : > { %941 = vmatprep.subr.mxu1 %v380_v49  ;;  %907 = vmatpush3.msra.mxu0 %v332_v50 }
  0x84   : > { %942 = vmatpush3.msra.mxu1 %v364_v51  ;;  %908 = vmatprep.subr.mxu0 %v347_v52 }
  0x85   : > { %943 = vmatprep.subr.mxu1 %v379_v53  ;;  %909 = vmatpush3.msra.mxu0 %v331_v54 }
  0x86   : > { %944 = vmatpush3.msra.mxu1 %v363_v55  ;;  %910 = vmatprep.subr.mxu0 %v346_v56 }
  0x87   : > { %945 = vmatprep.subr.mxu1 %v378_v57  ;;  %911 = vmatpush3.msra.mxu0 %v330_v58 }
  0x88   : > { %946 = vmatpush3.msra.mxu1 %v362_v59  ;;  %912 = vmatprep.subr.mxu0 %v345_v60 }
  0x89   : > { %947 = vmatprep.subr.mxu1 %v377_v61  ;;  %913 = vmatpush3.msra.mxu0 %v329_v62 }
  0x8a   : > { %948 = vmatpush3.msra.mxu1 %v361_v63  ;;  %914 = vmatprep.subr.mxu0 %v344_v0 }
  0x8b   : > { %949 = vmatprep.subr.mxu1 %v376_v1  ;;  %915 = vmatpush3.msra.mxu0 %v328_v2 }
  0x8c   : > { %603 = vmatprep.mubr.f32.mxu0 %v261_v3  ;;  %950 = vmatpush3.msra.mxu1 %v360_v4 }
  0x8d   : > { %673 = vmatprep.mubr.f32.mxu1 %v263_v5  ;;  %604 = vmatmul.mubr.f32.vlgmr.msra.gmra.mxu0 %v260_v6 }
  0x8e   : > { %674 = vmatmul.mubr.f32.vlgmr.msra.gmra.mxu1 %v262_v7 }
 0x12b   : > { %v846_v8 = vpop.f32.mrf.mxu0 }
 0x12d   : > { %v881_v9 = vpop.f32.mrf.mxu1  ;;  %v847_v10 = vpop.f32.mrf.mxu0 }
 0x12e   : > { %v848_v11 = vadd.f32 %v847_v10, %v846_v8 }
 0x12f   : > { %v882_v13 = vpop.f32.mrf.mxu1 }
 0x130   : > { %v466_v14 = vadd.f32 %v848_v11, %v807_v12  ;;  %v883_v15 = vadd.f32 %v882_v13, %v881_v9 }
 0x132   : > { %v536_v20 = vadd.f32 %v883_v15, %v466_v14 }
 0x14d   : > { %v916_v16 = vpop.f32.mrf.mxu0 }
 0x14e   : > { %v951_v17 = vpop.f32.mrf.mxu1 }
 0x14f   : > { %v917_v18 = vpop.f32.mrf.mxu0 }
 0x150   : > { %v952_v19 = vpop.f32.mrf.mxu1  ;;  %v918_v21 = vadd.f32 %v917_v18, %v916_v16 }
 0x151   : > { %v953_v23 = vadd.f32 %v952_v19, %v951_v17 }
 0x152   : > { %v606_v22 = vadd.f32 %v918_v21, %v536_v20 }
 0x154   : > { %v676_v25 = vadd.f32 %v953_v23, %v606_v22 }
 0x156   : > { %v686_v26 = vmin.f32 %v676_v25, %v808_v24 }
 0x158   : > { %v687_v27 = vmul.f32 1.442695, %v686_v26 }
 0x15a   : > { %1014 = vpow2.f32 %v687_v27 }
 0x167   : > { %v1015_v28 = vpop.eup %1014 }
 0x168   : > { %v691_v30 = vadd.f32 1.0, %v1015_v28 }
 0x16a   : > { %1016 = vrcp.f32 %v691_v30 }
 0x177   : > { %v1017_v37 = vpop.eup %1016 }
 0x178   : > { %v693_v38 = vmul.f32 %v1017_v37, %v1015_v28 }
 0x17a   : > { %v700_v39 = vsel %vm699_vm1, %v693_v38, %v1015_v28 }
 0x17b   : > { %701 = vst [vmem:[%s255_s23] sm:$0xff] %v700_v39 }
 0x17c   : > { %1085 = shalt.err (!%p1082_p0)
}
 0x17d   : > { %s1086_s29 = scalar_lea.hbm %s1320_s10, 128  ;;  %s1090_s7 = scalar_lea.hbm %s1361_s5, 384 }
 0x17e   : > { %p1087_p5 = scmp.ne.s32.totalorder %s1320_s10, %s1086_s29  ;;  %p1091_p1 = scmp.lt.s32.totalorder %s1320_s10, %s1361_s5 }
 0x17f   : > { %p1092_p4 = scmp.lt.s32.totalorder %s1090_s7, %s1086_s29 }
 0x180   : > { %p1088_p9 = pnand %p1087_p5, %p1377_p3 }
 0x181   : > { %p1093_p6 = por %p1092_p4, %p1091_p1 }
 0x182   : > { %p1089_p11 = pneg %p1088_p9 }
 0x184   : > { %p1094_p8 = pnand %p1093_p6, %p1089_p11 }
 0x186   : > { %1097 = shalt.err (!%p1094_p8)
}
 0x187   : > { %960 = dma.vmem_to_hbm [thread:$0]  (%p1377_p3), %s717_s15, 128, %s1320_s10, %s703_s11  }
 0x188 PF: > { %p977_p10 = scmp.ge.s32.totalorder %s1140_s21, 2  ;;  %s728_s17 = sand.u32 1, %s1128_s18  }
 0x189   : > { %p1378_p7 = scmp.ne.s32.totalorder %s1367_s25, 0  ;;  %s729_s23 = scalar_lea.sflag [#allocation4], %s728_s17 }
 0x18b   : > { %p971_p12 = pnand %p977_p10, %p1378_p7 }
 0x18d   : > { %p972_p2 = pneg %p971_p12 }
 0x18f   : > { %1123 = dma.done.wait (%p972_p2), %s729_s23, 128  }
 0x190   : > { %1125 = vsyncadd (%p972_p2), %s729_s23, 4294967168  ;;  %p19_p13 = scmp.ge.s32.totalorder %s1231_s30, 5   ;;  %s1379_s18 = smov %s1132_s19 }
 0x191   : > { %s1380_s19 = smov %s1136_s20  ;;  %s1381_s20 = smov %s1248_s13 }
 0x192   : > { %s1382_s21 = smov %s1231_s30  ;;  %21 = sbr.rel (!%p19_p13) target bundleno = 6 (0x6), region = 89 }
 0x197   :  { %734 = vsyncpa [#allocation3], 1 }
 0x198   :  { %736 = vsyncpa [#allocation3 + $0x1], 1 }
 0x199   :  { %737 = vsyncpa [#allocation6], 1 }
 0x19a   :  { %738 = vsyncpa [#allocation4], 1 }
 0x19b   :  { %740 = vsyncpa [#allocation4 + $0x1], 1 }

</bundles_post_ra>
